<compile_context>
chip_gen: v7x
topology: tpu7x:2x2x1
jax: 0.10.0
libtpu: 0.0.40
codegen_flags: <defaults>
</compile_context>

<pallas_src>
import functools

import jax
import jax.numpy as jnp
from jax.experimental import pallas as pl
from jax.experimental.pallas import tpu as pltpu

LANES = 128
TILE_ROWS = 2048              # 1 MiB f32 per operand per grid step (mem-bound path)
SINGLE_BLOCK_MAX_ROWS = 4096  # <= 2 MiB per input -> single ungridded block


def _triplet_single_block_kernel(a_ref, p_ref, n_ref, out_ref, *, margin):
    da = a_ref[...] - p_ref[...]
    dn = a_ref[...] - n_ref[...]
    d_ap = jnp.sqrt(jnp.sum(da * da))
    d_an = jnp.sqrt(jnp.sum(dn * dn))
    out_ref[0, 0] = jnp.maximum(d_ap - d_an + margin, 0.0)


def _triplet_tiled_kernel(a_ref, p_ref, n_ref, out_ref, acc_ap, acc_an, *, margin):
    i = pl.program_id(0)

    @pl.when(i == 0)
    def _():
        acc_ap[...] = jnp.zeros_like(acc_ap)
        acc_an[...] = jnp.zeros_like(acc_an)

    da = a_ref[...] - p_ref[...]
    dn = a_ref[...] - n_ref[...]
    # Per-lane vector accumulation (stays on VPU slots, hidden under the HBM
    # DMA of the next tile); the cross-lane reduce happens exactly once below.
    acc_ap[...] += da * da
    acc_an[...] += dn * dn

    @pl.when(i == pl.num_programs(0) - 1)
    def _():
        d_ap = jnp.sqrt(jnp.sum(acc_ap[...]))
        d_an = jnp.sqrt(jnp.sum(acc_an[...]))
        out_ref[0, 0] = jnp.maximum(d_ap - d_an + margin, 0.0)


def _to_lane_major(x, rows):
    """Flatten to f32 and reshape into a lane-dense (rows, 128) slab."""
    flat = jnp.ravel(x).astype(jnp.float32)
    pad = rows * LANES - flat.shape[0]
    if pad:
        flat = jnp.pad(flat, (0, pad))  # zeros don't change the sum of squares
    return flat.reshape(rows, LANES)


@functools.partial(jax.jit, static_argnames=("margin",))
def triplet_loss(a, p, n, margin=0.2):
    margin = float(margin)
    total = a.size
    rows = max(pl.cdiv(total, LANES), 1)

    if rows <= SINGLE_BLOCK_MAX_ROWS:
        # Single-step path: whole problem (~24 KiB for the module's shape) in
        # VMEM at once; one kernel invocation, scalar result in SMEM.
        a2 = _to_lane_major(a, rows)
        p2 = _to_lane_major(p, rows)
        n2 = _to_lane_major(n, rows)
        vmem_spec = pl.BlockSpec(memory_space=pltpu.MemorySpace.VMEM)
        out = pl.pallas_call(
            functools.partial(_triplet_single_block_kernel, margin=margin),
            out_shape=jax.ShapeDtypeStruct((1, 1), jnp.float32),
            in_specs=[vmem_spec, vmem_spec, vmem_spec],
            out_specs=pl.BlockSpec(memory_space=pltpu.MemorySpace.SMEM),
        )(a2, p2, n2)
        return out[0, 0]

    # Large-input path: tiled sequential reduction (HBM-bound; 1 MiB blocks,
    # double-buffered by BlockSpec; ~8 MiB VMEM total -> safe at default
    # scoped-VMEM limits on v5e/v6e/v7x).
    rows = pl.cdiv(rows, TILE_ROWS) * TILE_ROWS
    a2 = _to_lane_major(a, rows)
    p2 = _to_lane_major(p, rows)
    n2 = _to_lane_major(n, rows)

    blk = pl.BlockSpec((TILE_ROWS, LANES), lambda i: (i, 0))
    out = pl.pallas_call(
        functools.partial(_triplet_tiled_kernel, margin=margin),
        out_shape=jax.ShapeDtypeStruct((1, 1), jnp.float32),
        grid=(rows // TILE_ROWS,),
        in_specs=[blk, blk, blk],
        out_specs=pl.BlockSpec(memory_space=pltpu.MemorySpace.SMEM),
        scratch_shapes=[
            pltpu.VMEM((TILE_ROWS, LANES), jnp.float32),
            pltpu.VMEM((TILE_ROWS, LANES), jnp.float32),
        ],
        compiler_params=pltpu.CompilerParams(
            dimension_semantics=("arbitrary",)  # sequential reduction axis
        ),
    )(a2, p2, n2)
    # TODO(synk): for very large inputs on v7x, shard this reduction across the
    # two TensorCores (leading 'parallel' axis with per-core partial sums).
    return out[0, 0]


if __name__ == "__main__":
    key = jax.random.PRNGKey(0)
    ka, kp, kn = jax.random.split(key, 3)

    # --- Small case (the module's implied shape): single-block path. ---
    shape = (2, 4, 16, 16)  # NCHW
    a = jax.random.normal(ka, shape, dtype=jnp.float32)
    p = jax.random.normal(kp, shape, dtype=jnp.float32)
    n = jax.random.normal(kn, shape, dtype=jnp.float32)

    loss = triplet_loss(a, p, n, margin=0.2)
    jax.block_until_ready(loss)

    ref = jnp.maximum(
        jnp.linalg.norm(a - p) - jnp.linalg.norm(a - n) + 0.2, 0.0
    )
    assert jnp.allclose(loss, ref, rtol=1e-3, atol=1e-3), (loss, ref)

    # --- Larger case: exercises the tiled grid/accumulator path (4 steps). ---
    big = (8, 32, 64, 64)  # 1,048,576 elements -> 8192 rows of 128 lanes
    ab = jax.random.normal(ka, big, dtype=jnp.float32)
    pb = jax.random.normal(kp, big, dtype=jnp.float32)
    nb = jax.random.normal(kn, big, dtype=jnp.float32)

    loss_big = triplet_loss(ab, pb, nb, margin=0.2)
    jax.block_until_ready(loss_big)

    ref_big = jnp.maximum(
        jnp.linalg.norm(ab - pb) - jnp.linalg.norm(ab - nb) + 0.2, 0.0
    )
    # Difference-of-norms amplifies f32 reduction-order noise -> loose tol.
    assert jnp.allclose(loss_big, ref_big, rtol=1e-2, atol=1e-2), (loss_big, ref_big)

    print("KERNEL_OK")
</pallas_src>

<mosaic_0001>
module attributes {stable_mosaic.version = 11 : i64} {
  func.func @_triplet_single_block_kernel(%arg0: memref<16x128xf32, #tpu.memory_space<vmem>>, %arg1: memref<16x128xf32, #tpu.memory_space<vmem>>, %arg2: memref<16x128xf32, #tpu.memory_space<vmem>>, %arg3: memref<1x1xf32, #tpu.memory_space<smem>>) attributes {dimension_semantics = [], scalar_prefetch = 0 : i64, scratch_operands = 0 : i64, tpu.core_type = #tpu.core_type<tc>} {
    %c0 = arith.constant 0 : index
    %c0_0 = arith.constant 0 : index
    %0 = vector.load %arg0[%c0, %c0_0] : memref<16x128xf32, #tpu.memory_space<vmem>>, vector<16x128xf32>
    %c0_1 = arith.constant 0 : index
    %c0_2 = arith.constant 0 : index
    %1 = vector.load %arg1[%c0_1, %c0_2] : memref<16x128xf32, #tpu.memory_space<vmem>>, vector<16x128xf32>
    %2 = arith.subf %0, %1 : vector<16x128xf32>
    %c0_3 = arith.constant 0 : index
    %c0_4 = arith.constant 0 : index
    %3 = vector.load %arg0[%c0_3, %c0_4] : memref<16x128xf32, #tpu.memory_space<vmem>>, vector<16x128xf32>
    %c0_5 = arith.constant 0 : index
    %c0_6 = arith.constant 0 : index
    %4 = vector.load %arg2[%c0_5, %c0_6] : memref<16x128xf32, #tpu.memory_space<vmem>>, vector<16x128xf32>
    %5 = arith.subf %3, %4 : vector<16x128xf32>
    %6 = arith.mulf %2, %2 : vector<16x128xf32>
    %7 = vector.shape_cast %6 : vector<16x128xf32> to vector<1x16x128xf32>
    %cst = arith.constant dense<0.000000e+00> : vector<1xf32>
    %8 = vector.multi_reduction <add>, %7, %cst [1, 2] : vector<1x16x128xf32> to vector<1xf32>
    %9 = vector.shape_cast %8 : vector<1xf32> to vector<1x1x1xf32>
    %10 = vector.extract %9[0, 0, 0] : f32 from vector<1x1x1xf32>
    %11 = math.sqrt %10 : f32
    %12 = arith.mulf %5, %5 : vector<16x128xf32>
    %13 = vector.shape_cast %12 : vector<16x128xf32> to vector<1x16x128xf32>
    %cst_7 = arith.constant dense<0.000000e+00> : vector<1xf32>
    %14 = vector.multi_reduction <add>, %13, %cst_7 [1, 2] : vector<1x16x128xf32> to vector<1xf32>
    %15 = vector.shape_cast %14 : vector<1xf32> to vector<1x1x1xf32>
    %16 = vector.extract %15[0, 0, 0] : f32 from vector<1x1x1xf32>
    %17 = math.sqrt %16 : f32
    %18 = arith.subf %11, %17 : f32
    %cst_8 = arith.constant 2.000000e-01 : f32
    %19 = arith.addf %18, %cst_8 : f32
    %cst_9 = arith.constant 0.000000e+00 : f32
    %20 = arith.maximumf %19, %cst_9 : f32
    %c0_10 = arith.constant 0 : index
    %c0_11 = arith.constant 0 : index
    %21 = memref.load %arg3[%c0_10, %c0_11] : memref<1x1xf32, #tpu.memory_space<smem>>
    memref.store %20, %arg3[%c0_10, %c0_11] : memref<1x1xf32, #tpu.memory_space<smem>>
    return
  }
}

</mosaic_0001>

<bundles_post_ra>
// kernel: triplet_loss.1
= control target key start
LH: loop header
LB: loop body
LE: loop exit
PB: predicated region body
PF: predicated region fallthrough
CT: control target
= control target key end

     0   :  { %s163_s0 = inlined_call_operand.vmem [shape: f32[16,128], index: 0, kind: input, shape index: {}]   ;;  %s164_s1 = inlined_call_operand.vmem [shape: f32[16,128], index: 1, kind: input, shape index: {}]   ;;  %s165_s2 = inlined_call_operand.vmem [shape: f32[16,128], index: 2, kind: input, shape index: {}]   ;;  %s166_s3 = inlined_call_operand.hbm [shape: f32[1,1], index: 3, kind: output, shape index: {}]  }
   0x1   :  { %v15_v0 = vld [vmem:[%s163_s0] sm:$0xff]  ;;  %v16_v1 = vld [vmem:[%s163_s0 + $0x8] sm:$0xff] }
   0x2   :  { %v17_v2 = vld [vmem:[%s164_s1] sm:$0xff]  ;;  %v18_v3 = vld [vmem:[%s164_s1 + $0x8] sm:$0xff] }
   0x3   :  { %v19_v4 = vsub.f32 %v15_v0, %v17_v2  ;;  %v21_v5 = vld [vmem:[%s165_s2] sm:$0xff]  ;;  %v22_v6 = vld [vmem:[%s165_s2 + $0x8] sm:$0xff]  ;;  %v20_v7 = vsub.f32 %v16_v1, %v18_v3 }
   0x4   :  { %v23_v8 = vsub.f32 %v15_v0, %v21_v5  ;;  %v24_v9 = vsub.f32 %v16_v1, %v22_v6 }
   0x5   :  { %8 = vsyncpa [#allocation3], 0  ;;  %v25_v10 = vmul.f32 %v19_v4, %v19_v4  ;;  %v26_v11 = vmul.f32 %v20_v7, %v20_v7  ;;  %s111_s27 = smov 0.0   ;;  %s99_s4 = scalar_lea.hbm %s166_s3, 16 }
   0x6   :  { %v46_v12 = vmul.f32 %v23_v8, %v23_v8  ;;  %v47_v13 = vmul.f32 %v24_v9, %v24_v9  ;;  %p100_p0 = scmp.ne.s32.totalorder %s166_s3, %s99_s4  ;;  %p103_p1 = scmp.lt.u32.totalorder %s99_s4, %s166_s3 }
   0x7   :  { %v27_v14 = vadd.f32 %v26_v11, %v25_v10 }
   0x8   :  { %v48_v15 = vadd.f32 %v47_v13, %v46_v12  ;;  %p105_p2 = pnand %p103_p1, %p100_p0 }
   0x9   :  { %28 = vadd.xlane.f32.xlu0 %v27_v14 }
   0xd   :  { %49 = vadd.xlane.f32.xlu0 %v48_v15 }
  0x96   :  { %v29_v16 = vpop.xlane.xlu0 %28 }
  0x97   :  { %v30_v17 = vrot.slane %v29_v16, 4 }
  0x99   :  { %v31_v18 = vadd.f32 %v30_v17, %v29_v16 }
  0x9a   :  { %v50_v23 = vpop.xlane.xlu0 %49 }
  0x9b   :  { %v32_v19 = vrot.slane %v31_v18, 2  ;;  %v51_v24 = vrot.slane %v50_v23, 4 }
  0x9d   :  { %v33_v20 = vadd.f32 %v32_v19, %v31_v18  ;;  %v52_v25 = vadd.f32 %v51_v24, %v50_v23 }
  0x9f   :  { %v34_v21 = vrot.slane %v33_v20, 1  ;;  %v53_v27 = vrot.slane %v52_v25, 2 }
  0xa1   :  { %v35_v22 = vadd.f32 %v34_v21, %v33_v20  ;;  %v54_v28 = vadd.f32 %v53_v27, %v52_v25 }
  0xa3   :  { %85 = vpush %v35_v22  ;;  %v55_v30 = vrot.slane %v54_v28, 1 }
  0xa5   :  { %v56_v35 = vadd.f32 %v55_v30, %v54_v28 }
  0xd4   :  { %s86_s0 = spop %85 }
  0xd5   :  { %v37_v26 = vstv %s86_s0 }
  0xd6   :  { %95 = vrsqrt.f32 %v37_v26  ;;  %vm40_vm0 = vcmp.eq.f32.partialorder %v37_v26, inf  ;;  %v43_v32 = vand.u32 2147483648, %v37_v26  ;;  %vm42_vm1 = vcmp.eq.f32.partialorder %v37_v26, 0.0 }
  0xe0   :  { %v96_v29 = vpop.eup %95 }
  0xe1   :  { %v39_v31 = vmul.f32 %v96_v29, %v37_v26 }
  0xe3   :  { %v41_v33 = vsel %vm40_vm0, %v37_v26, %v39_v31 }
  0xe4   :  { %v44_v34 = vsel %vm42_vm1, %v43_v32, %v41_v33 }
  0xe5   :  { %87 = vpush %v44_v34 }
  0xe6   :  { %89 = vpush %v56_v35 }
 0x116   :  { %s88_s1 = spop %87 }
 0x117   :  { %s90_s2 = spop %89 }
 0x118   :  { %v58_v36 = vstv %s90_s2 }
 0x119   :  { %97 = vrsqrt.f32 %v58_v36  ;;  %vm61_vm2 = vcmp.eq.f32.partialorder %v58_v36, inf  ;;  %v64_v39 = vand.u32 2147483648, %v58_v36  ;;  %vm63_vm3 = vcmp.eq.f32.partialorder %v58_v36, 0.0 }
 0x123   :  { %v98_v37 = vpop.eup %97 }
 0x124   :  { %v60_v38 = vmul.f32 %v98_v37, %v58_v36 }
 0x126   :  { %v62_v40 = vsel %vm61_vm2, %v58_v36, %v60_v38 }
 0x127   :  { %v65_v41 = vsel %vm63_vm3, %v64_v39, %v62_v40 }
 0x128   :  { %91 = vpush %v65_v41 }
 0x159   :  { %s92_s24 = spop %91 }
 0x15a   :  { %s67_s25 = ssub.f32 %s88_s1, %s92_s24 }
 0x15c   :  { %s68_s26 = sadd.f32 0.2, %s67_s25 }
 0x15e   :  { %s69_s28 = smax.f32 %s111_s27, %s68_s26 }
 0x15f   :  { %71 = sst [smem:[#allocation2]] %s69_s28 }
 0x160   :  { %108 = shalt.err (!%p105_p2)
}
 0x161   :  { %s112_s9 = smov [#allocation2]  }
 0x162   :  { %79 = dma.smem_to_hbm %s112_s9, 16, %s166_s3, [#allocation3]  }
 0x163   :  { %109 = dma.done.wait [#allocation3], 16  }
 0x164   :  { %110 = vsyncadd [#allocation3], 4294967280 }
 0x165   :  { %83 = sfence }
 0x166   :  { %84 = vsyncpa [#allocation3], 1 }

</bundles_post_ra>
